<compile_context>
chip_gen: v6e
topology: v6e:2x2x1
jax: 0.10.0
libtpu: 0.0.40
codegen_flags: <defaults>
</compile_context>

<pallas_src>
import functools

import jax
import jax.numpy as jnp
from jax.experimental import pallas as pl
from jax.experimental.pallas import tpu as pltpu


def _round_up(x: int, m: int) -> int:
    return ((x + m - 1) // m) * m


def _choose_batch_tile(batch: int, block_batch: int):
    """Pick (tb, pad_batch) so tb % 8 == 0 and grid_b is >= 2 / even if possible."""
    b8 = _round_up(batch, 8)
    tb = _round_up(min(block_batch, b8), 8)
    grid_b = _round_up(batch, tb) // tb
    # v7x has 2 TensorCores; with dimension_semantics=("parallel",) the grid is
    # sharded across them, so prefer an even grid count >= 2 once batch > 8.
    if batch > 8 and (grid_b < 2 or grid_b % 2 == 1):
        target = max(2, grid_b + (grid_b % 2))
        tb = max(8, _round_up(-(-batch // target), 8))
    pad_batch = _round_up(batch, tb)
    return tb, pad_batch


def _actor_kernel(x_ref, w1_ref, b1_ref, w2_ref, b2_ref, w3_ref, b3_ref,
                  o_ref, *, max_action: float):
    """Fused forward: tanh((relu((relu(x@W1+b1))@W2+b2))@W3+b3) * max_action.

    MXU operands use the weights' dtype (bf16 on the fast path); accumulation,
    bias-add, ReLU and tanh stay in f32.
    """
    cdt = w1_ref.dtype  # compute dtype of MXU operands (bf16 or f32)
    x = x_ref[...].astype(cdt)  # (TB, state_dim)

    # Layer 1: Linear(state_dim -> 128) + ReLU
    h1 = jnp.dot(x, w1_ref[...], preferred_element_type=jnp.float32) + b1_ref[...]
    h1 = jnp.maximum(h1, 0.0).astype(cdt)

    # Layer 2: Linear(128 -> 128) + ReLU
    h2 = jnp.dot(h1, w2_ref[...], preferred_element_type=jnp.float32) + b2_ref[...]
    h2 = jnp.maximum(h2, 0.0).astype(cdt)

    # Layer 3: Linear(128 -> action_dim) + Tanh, scaled by max_action
    h3 = jnp.dot(h2, w3_ref[...], preferred_element_type=jnp.float32) + b3_ref[...]
    o_ref[...] = (jnp.tanh(h3) * jnp.float32(max_action)).astype(o_ref.dtype)


def simple_actor_forward(state, params, max_action: float = 1.0,
                         block_batch: int = 1024, use_bf16: bool = True):
    """Run the SimpleActor forward pass as one Pallas kernel call.

    state:  (batch, state_dim) float32
    params: dict with w1 (S,128), b1 (1,128), w2 (128,128), b2 (1,128),
            w3 (128,A), b3 (1,A)   (all float32)
    returns (batch, action_dim) float32
    """
    batch, state_dim = state.shape
    hidden = params["w1"].shape[1]
    action_dim = params["w3"].shape[1]

    # MXU operand dtype: bf16 (fast path) or f32 (validation path).
    wdt = jnp.bfloat16 if use_bf16 else jnp.float32
    w1 = params["w1"].astype(wdt)
    w2 = params["w2"].astype(wdt)
    w3 = params["w3"].astype(wdt)
    b1, b2, b3 = params["b1"], params["b2"], params["b3"]  # biases stay f32

    # --- Batch tiling: TB rows per grid step, grid_b >= 2 / even when possible.
    tb, pad_batch = _choose_batch_tile(batch, block_batch)
    if pad_batch != batch:
        state_p = jnp.pad(state, ((0, pad_batch - batch), (0, 0)))
    else:
        state_p = state
    grid_b = pad_batch // tb

    kernel = functools.partial(_actor_kernel, max_action=max_action)

    w_itemsize = jnp.dtype(wdt).itemsize
    flops = 2 * pad_batch * (state_dim * hidden + hidden * hidden
                             + hidden * action_dim)
    bytes_accessed = (
        4 * pad_batch * state_dim                                    # state in (f32)
        + w_itemsize * (state_dim * hidden + hidden * hidden
                        + hidden * action_dim)                       # W1, W2, W3
        + 4 * (hidden + hidden + action_dim)                         # b1, b2, b3
        + 4 * pad_batch * action_dim                                 # output (narrow, f32)
    )

    out_padded = pl.pallas_call(
        kernel,
        out_shape=jax.ShapeDtypeStruct((pad_batch, action_dim), jnp.float32),
        grid=(grid_b,),
        in_specs=[
            # State: tiled along batch, pipelined/double-buffered.
            pl.BlockSpec((tb, state_dim), lambda i: (i, 0)),
            # Weights / biases: constant block index -> resident in VMEM.
            pl.BlockSpec(w1.shape, lambda i: (0, 0)),
            pl.BlockSpec(b1.shape, lambda i: (0, 0)),
            pl.BlockSpec(w2.shape, lambda i: (0, 0)),
            pl.BlockSpec(b2.shape, lambda i: (0, 0)),
            pl.BlockSpec(w3.shape, lambda i: (0, 0)),
            pl.BlockSpec(b3.shape, lambda i: (0, 0)),
        ],
        # Narrow output: block last dim == full array dim (action_dim), so this
        # is legal; keeps output HBM writes at 4*A bytes/row instead of 512.
        out_specs=pl.BlockSpec((tb, action_dim), lambda i: (i, 0)),
        compiler_params=pltpu.CompilerParams(
            dimension_semantics=("parallel",)),
        cost_estimate=pl.CostEstimate(
            flops=flops,
            transcendentals=pad_batch * action_dim,
            bytes_accessed=bytes_accessed),
    )(state_p, w1, b1, w2, b2, w3, b3)

    # Slice off padded rows (ragged batch).
    return out_padded[:batch, :]


def init_params(key, state_dim: int, action_dim: int, hidden: int = 128):
    """Deterministic synthetic init (PyTorch-Linear-like uniform fan-in scaling)."""
    ks = jax.random.split(key, 6)

    def lin(kw, kb, fan_in, fan_out):
        bound = 1.0 / jnp.sqrt(jnp.float32(fan_in))
        w = jax.random.uniform(kw, (fan_in, fan_out), jnp.float32, -bound, bound)
        b = jax.random.uniform(kb, (1, fan_out), jnp.float32, -bound, bound)
        return w, b

    w1, b1 = lin(ks[0], ks[1], state_dim, hidden)
    w2, b2 = lin(ks[2], ks[3], hidden, hidden)
    w3, b3 = lin(ks[4], ks[5], hidden, action_dim)
    return {"w1": w1, "b1": b1, "w2": w2, "b2": b2, "w3": w3, "b3": b3}


def simple_actor_ref(state, params, max_action: float = 1.0):
    """Pure-JAX f32 reference for correctness checking."""
    h = jnp.maximum(state @ params["w1"] + params["b1"], 0.0)
    h = jnp.maximum(h @ params["w2"] + params["b2"], 0.0)
    return max_action * jnp.tanh(h @ params["w3"] + params["b3"])


if __name__ == "__main__":
    key = jax.random.PRNGKey(0)
    k_param, k_state1, k_state2 = jax.random.split(key, 3)

    state_dim, action_dim = 32, 8
    max_action = 2.0
    params = init_params(k_param, state_dim, action_dim)

    # Case 1: tiny batch, f32 MXU path (single grid step) -> tight tolerance.
    state_small = jax.random.normal(k_state1, (8, state_dim), dtype=jnp.float32)
    out_small = jax.block_until_ready(
        simple_actor_forward(state_small, params, max_action=max_action,
                             use_bf16=False))
    ref_small = simple_actor_ref(state_small, params, max_action=max_action)
    assert out_small.shape == (8, action_dim)
    assert jnp.allclose(out_small, ref_small, atol=1e-5, rtol=1e-5), \
        "mismatch vs reference (small batch, f32 path)"

    # Case 2: ragged batch, forced small tile -> multiple (even) grid steps,
    # bf16 MXU fast path -> relaxed tolerance vs the f32 reference.
    state_big = jax.random.normal(k_state2, (300, state_dim), dtype=jnp.float32)
    ref_big = simple_actor_ref(state_big, params, max_action=max_action)

    out_big = jax.block_until_ready(
        simple_actor_forward(state_big, params, max_action=max_action,
                             block_batch=128))
    assert out_big.shape == (300, action_dim)
    assert jnp.allclose(out_big, ref_big, atol=5e-2, rtol=0.0), \
        "mismatch vs reference (tiled batch, bf16 path)"

    # Case 3: default block_batch -> tile chooser splits batch into 2 grid
    # steps (keeps v7x's second TensorCore busy), bf16 fast path.
    out_big2 = jax.block_until_ready(
        simple_actor_forward(state_big, params, max_action=max_action))
    assert out_big2.shape == (300, action_dim)
    assert jnp.allclose(out_big2, ref_big, atol=5e-2, rtol=0.0), \
        "mismatch vs reference (default tile, bf16 path)"

    print("KERNEL_OK")
</pallas_src>

<mosaic_0001>
module attributes {stable_mosaic.version = 11 : i64} {
  func.func @_actor_kernel(%arg0: i32, %arg1: memref<8x32xf32, #tpu.memory_space<vmem>>, %arg2: memref<32x128xf32, #tpu.memory_space<vmem>>, %arg3: memref<1x128xf32, #tpu.memory_space<vmem>>, %arg4: memref<128x128xf32, #tpu.memory_space<vmem>>, %arg5: memref<1x128xf32, #tpu.memory_space<vmem>>, %arg6: memref<128x8xf32, #tpu.memory_space<vmem>>, %arg7: memref<1x8xf32, #tpu.memory_space<vmem>>, %arg8: memref<8x8xf32, #tpu.memory_space<vmem>>) attributes {dimension_semantics = [#tpu.dimension_semantics<parallel>], iteration_bounds = array<i64: 1>, scalar_prefetch = 0 : i64, scratch_operands = 0 : i64, tpu.core_type = #tpu.core_type<tc>, window_params = [{transform_indices = @transform_0, window_bounds = array<i64: 8, 32>}, {pipeline_mode = #tpu.pipeline_mode<synchronous>, transform_indices = @transform_1, window_bounds = array<i64: 32, 128>}, {pipeline_mode = #tpu.pipeline_mode<synchronous>, transform_indices = @transform_2, window_bounds = array<i64: 1, 128>}, {pipeline_mode = #tpu.pipeline_mode<synchronous>, transform_indices = @transform_3, window_bounds = array<i64: 128, 128>}, {pipeline_mode = #tpu.pipeline_mode<synchronous>, transform_indices = @transform_4, window_bounds = array<i64: 1, 128>}, {pipeline_mode = #tpu.pipeline_mode<synchronous>, transform_indices = @transform_5, window_bounds = array<i64: 128, 8>}, {pipeline_mode = #tpu.pipeline_mode<synchronous>, transform_indices = @transform_6, window_bounds = array<i64: 1, 8>}, {transform_indices = @transform_7, window_bounds = array<i64: 8, 8>}]} {
    %c0 = arith.constant 0 : index
    %c0_0 = arith.constant 0 : index
    %0 = vector.load %arg1[%c0, %c0_0] : memref<8x32xf32, #tpu.memory_space<vmem>>, vector<8x32xf32>
    %c0_1 = arith.constant 0 : index
    %c0_2 = arith.constant 0 : index
    %1 = vector.load %arg2[%c0_1, %c0_2] : memref<32x128xf32, #tpu.memory_space<vmem>>, vector<32x128xf32>
    %cst = arith.constant dense<0.000000e+00> : vector<8x128xf32>
    %2 = tpu.matmul %0, %1, %cst {dimension_numbers = #tpu.dot_dimension_numbers<[1], [0], [0], [1], [0, 0, 1, 1], [], []>} : vector<8x32xf32>, vector<32x128xf32>, vector<8x128xf32> -> vector<8x128xf32>
    %c0_3 = arith.constant 0 : index
    %c0_4 = arith.constant 0 : index
    %3 = vector.load %arg3[%c0_3, %c0_4] : memref<1x128xf32, #tpu.memory_space<vmem>>, vector<1x128xf32>
    %4 = vector.broadcast %3 : vector<1x128xf32> to vector<8x128xf32>
    %5 = arith.addf %2, %4 : vector<8x128xf32>
    %cst_5 = arith.constant 0.000000e+00 : f32
    %6 = vector.broadcast %cst_5 : f32 to vector<8x128xf32>
    %7 = arith.maximumf %5, %6 : vector<8x128xf32>
    %c0_6 = arith.constant 0 : index
    %c0_7 = arith.constant 0 : index
    %8 = vector.load %arg4[%c0_6, %c0_7] : memref<128x128xf32, #tpu.memory_space<vmem>>, vector<128x128xf32>
    %cst_8 = arith.constant dense<0.000000e+00> : vector<8x128xf32>
    %9 = tpu.matmul %7, %8, %cst_8 {dimension_numbers = #tpu.dot_dimension_numbers<[1], [0], [0], [1], [0, 0, 1, 1], [], []>} : vector<8x128xf32>, vector<128x128xf32>, vector<8x128xf32> -> vector<8x128xf32>
    %c0_9 = arith.constant 0 : index
    %c0_10 = arith.constant 0 : index
    %10 = vector.load %arg5[%c0_9, %c0_10] : memref<1x128xf32, #tpu.memory_space<vmem>>, vector<1x128xf32>
    %11 = vector.broadcast %10 : vector<1x128xf32> to vector<8x128xf32>
    %12 = arith.addf %9, %11 : vector<8x128xf32>
    %cst_11 = arith.constant 0.000000e+00 : f32
    %13 = vector.broadcast %cst_11 : f32 to vector<8x128xf32>
    %14 = arith.maximumf %12, %13 : vector<8x128xf32>
    %c0_12 = arith.constant 0 : index
    %c0_13 = arith.constant 0 : index
    %15 = vector.load %arg6[%c0_12, %c0_13] : memref<128x8xf32, #tpu.memory_space<vmem>>, vector<128x8xf32>
    %cst_14 = arith.constant dense<0.000000e+00> : vector<8x8xf32>
    %16 = tpu.matmul %14, %15, %cst_14 {dimension_numbers = #tpu.dot_dimension_numbers<[1], [0], [0], [1], [0, 0, 1, 1], [], []>} : vector<8x128xf32>, vector<128x8xf32>, vector<8x8xf32> -> vector<8x8xf32>
    %c0_15 = arith.constant 0 : index
    %c0_16 = arith.constant 0 : index
    %17 = vector.load %arg7[%c0_15, %c0_16] : memref<1x8xf32, #tpu.memory_space<vmem>>, vector<1x8xf32>
    %18 = vector.broadcast %17 : vector<1x8xf32> to vector<8x8xf32>
    %19 = arith.addf %16, %18 : vector<8x8xf32>
    %20 = math.tanh %19 : vector<8x8xf32>
    %cst_17 = arith.constant 2.000000e+00 : f32
    %21 = vector.broadcast %cst_17 : f32 to vector<8x8xf32>
    %22 = arith.mulf %20, %21 : vector<8x8xf32>
    %c0_18 = arith.constant 0 : index
    %c0_19 = arith.constant 0 : index
    %23 = vector.load %arg8[%c0_18, %c0_19] : memref<8x8xf32, #tpu.memory_space<vmem>>, vector<8x8xf32>
    tpu.vector_store %arg8[%c0_18, %c0_19], %22 {strides = array<i32>} : memref<8x8xf32, #tpu.memory_space<vmem>>, vector<8x8xf32>,
    return
  }
  func.func @transform_0(%arg0: i32) -> (i32, i32) {
    %c0_i32 = arith.constant 0 : i32
    %c0_i32_0 = arith.constant 0 : i32
    return %arg0, %c0_i32 : i32, i32
  }
  func.func @transform_1(%arg0: i32) -> (i32, i32) {
    %c0_i32 = arith.constant 0 : i32
    %c0_i32_0 = arith.constant 0 : i32
    %c0_i32_1 = arith.constant 0 : i32
    return %c0_i32, %c0_i32_0 : i32, i32
  }
  func.func @transform_2(%arg0: i32) -> (i32, i32) {
    %c0_i32 = arith.constant 0 : i32
    %c0_i32_0 = arith.constant 0 : i32
    %c0_i32_1 = arith.constant 0 : i32
    return %c0_i32, %c0_i32_0 : i32, i32
  }
  func.func @transform_3(%arg0: i32) -> (i32, i32) {
    %c0_i32 = arith.constant 0 : i32
    %c0_i32_0 = arith.constant 0 : i32
    %c0_i32_1 = arith.constant 0 : i32
    return %c0_i32, %c0_i32_0 : i32, i32
  }
  func.func @transform_4(%arg0: i32) -> (i32, i32) {
    %c0_i32 = arith.constant 0 : i32
    %c0_i32_0 = arith.constant 0 : i32
    %c0_i32_1 = arith.constant 0 : i32
    return %c0_i32, %c0_i32_0 : i32, i32
  }
  func.func @transform_5(%arg0: i32) -> (i32, i32) {
    %c0_i32 = arith.constant 0 : i32
    %c0_i32_0 = arith.constant 0 : i32
    %c0_i32_1 = arith.constant 0 : i32
    return %c0_i32, %c0_i32_0 : i32, i32
  }
  func.func @transform_6(%arg0: i32) -> (i32, i32) {
    %c0_i32 = arith.constant 0 : i32
    %c0_i32_0 = arith.constant 0 : i32
    %c0_i32_1 = arith.constant 0 : i32
    return %c0_i32, %c0_i32_0 : i32, i32
  }
  func.func @transform_7(%arg0: i32) -> (i32, i32) {
    %c0_i32 = arith.constant 0 : i32
    %c0_i32_0 = arith.constant 0 : i32
    return %arg0, %c0_i32 : i32, i32
  }
}

</mosaic_0001>

<bundles_post_ra>
// kernel: tpu_custom_call.1
= control target key start
LH: loop header
LB: loop body
LE: loop exit
PB: predicated region body
PF: predicated region fallthrough
CT: control target
= control target key end

     0   :  { %12 = vsyncpa [#allocation3], 0  ;;  %s749_s0 = inlined_call_operand.vmem [shape: f32[8,32], index: 0, kind: input, shape index: {}]   ;;  %s750_s1 = inlined_call_operand.hbm [shape: f32[32,128], index: 1, kind: input, shape index: {}]   ;;  %s751_s2 = inlined_call_operand.vmem [shape: f32[1,128], index: 2, kind: input, shape index: {}]   ;;  %s752_s3 = inlined_call_operand.vmem [shape: f32[128,128], index: 3, kind: input, shape index: {}]   ;;  %s753_s4 = inlined_call_operand.hbm [shape: f32[1,128], index: 4, kind: input, shape index: {}]   ;;  %s754_s5 = inlined_call_operand.vmem [shape: f32[128,8], index: 5, kind: input, shape index: {}]   ;;  %s755_s6 = inlined_call_operand.vmem [shape: f32[1,8], index: 6, kind: input, shape index: {}]   ;;  %s756_s7 = inlined_call_operand.hbm [shape: f32[8,8], index: 7, kind: output, shape index: {}]  }
   0x1   :  { %13 = vsyncpa [#allocation6], 0 }
   0x2   :  { %14 = vsyncpa [#allocation4], 0  ;;  %s546_s24 = smov [#allocation2]  }
   0x3   :  { %s22_s25 = sshll.u32 %s546_s24, 4  ;;  %s23_s25 = int_to_ptr.vmem [resolvable:$true] %s22_s25 }
   0x4   :  { %s488_s26 = scalar_lea.vmem %s23_s25, 512  ;;  %p493_p1 = scmp.lt.s32.totalorder %s23_s25, %s23_s25 }
   0x5   :  { %p489_p0 = scmp.ne.s32.totalorder %s23_s25, %s488_s26  ;;  %p494_p2 = scmp.lt.s32.totalorder %s488_s26, %s488_s26 }
   0x7   :  { %p495_p3 = por %p494_p2, %p493_p1 }
   0x9   :  { %p496_p4 = pnand %p495_p3, %p489_p0 }
   0xb   :  { %499 = shalt.err (!%p496_p4)
}
   0xc   :  { %s547_s27 = smov 128   ;;  %s548_s28 = smov 8  }
   0xd   :  { %28 = dma.hbm_to_vmem [thread:$0]  %s750_s1, 512, %s23_s25, [#allocation3], %s547_s27, %s547_s27, %s548_s28  }
   0xe   :  { %s549_s8 = smov [#allocation5]  }
   0xf   :  { %s39_s9 = sshll.u32 %s549_s8, 4  ;;  %s40_s9 = int_to_ptr.vmem [resolvable:$true] %s39_s9 }
  0x10   :  { %s508_s10 = scalar_lea.vmem %s40_s9, 16  ;;  %s512_s11 = scalar_lea.vmem %s40_s9, 32 }
  0x11   :  { %p509_p5 = scmp.ne.s32.totalorder %s40_s9, %s508_s10  ;;  %p513_p6 = scmp.lt.s32.totalorder %s40_s9, %s40_s9 }
  0x12   :  { %p514_p7 = scmp.lt.s32.totalorder %s512_s11, %s508_s10 }
  0x14   :  { %p515_p8 = por %p514_p7, %p513_p6 }
  0x16   :  { %p516_p9 = pnand %p515_p8, %p509_p5 }
  0x18   :  { %519 = shalt.err (!%p516_p9)
}
  0x19   :  { %42 = dma.hbm_to_vmem [thread:$0]  %s753_s4, 16, %s40_s9, [#allocation6]  }
  0x1a   :  { %540 = dma.done.wait [#allocation3], 512  }
  0x1b   :  { %541 = vsyncadd [#allocation3], 4294966784 }
  0x1c   :  { %542 = dma.done.wait [#allocation6], 16  }
  0x1d   :  { %543 = vsyncadd [#allocation6], 4294967280  ;;  %v550_v0 = vmov 0.0   ;;  %vm551_vm0 = vmmov 0   ;;  %v57_v1 = vld [vmem:[#allocation2 + $0x18] sm:$0xff]  ;;  %v56_v2 = vld [vmem:[#allocation2 + $0x10] sm:$0xff] }
  0x1e   :  { %390 = vmatprep.subr.mxu0 %v550_v0  ;;  %398 = vmatprep.mubr.msk.f32.mxu0 %vm551_vm0, %v550_v0  ;;  %v155_v3 = vld [vmem:[%s752_s3 + $0x78] sm:$0xff]  ;;  %v55_v4 = vld [vmem:[#allocation2 + $0x8] sm:$0xff]  ;;  %v154_v5 = vld [vmem:[%s752_s3 + $0x70] sm:$0xff]  ;;  %vm65_vm1 = vcmask 261120   ;;  %s552_s26 = smov [#allocation7]   ;;  %vm329_vm2 = vcmask 64512  }
  0x1f   :  { %401 = vmatprep.subr.mxu1 %v550_v0  ;;  %433 = vmatprep.mubr.msk.f32.mxu1 %vm551_vm0, %v550_v0  ;;  %v153_v6 = vld [vmem:[%s752_s3 + $0x68] sm:$0xff]  ;;  %v54_v7 = vld [vmem:[#allocation2] sm:$0xff]  ;;  %v151_v10 = vld [vmem:[%s752_s3 + $0x58] sm:$0xff]  ;;  %s337_s27 = sshll.u32 %s552_s26, 4  ;;  %s338_s27 = int_to_ptr.vmem [resolvable:$true] %s337_s27 }
  0x20   :  { %391 = vmatpush3.msra.mxu0 %v57_v1  ;;  %402 = vmatpush3.msra.mxu1 %v155_v3  ;;  %v53_v8 = vld [vmem:[%s749_s0] sm:$0xff]  ;;  %v150_v11 = vld [vmem:[%s752_s3 + $0x50] sm:$0xff]  ;;  %v149_v12 = vld [vmem:[%s752_s3 + $0x48] sm:$0xff]  ;;  %p525_p11 = scmp.lt.s32.totalorder %s338_s27, %s338_s27 }
  0x21   :  { %392 = vmatprep.subr.mxu0 %v550_v0  ;;  %403 = vmatprep.subr.mxu1 %v550_v0  ;;  %v152_v9 = vld [vmem:[%s752_s3 + $0x60] sm:$0xff]  ;;  %v147_v14 = vld [vmem:[%s752_s3 + $0x38] sm:$0xff]  ;;  %v146_v15 = vld [vmem:[%s752_s3 + $0x30] sm:$0xff] }
  0x22   :  { %393 = vmatpush3.msra.mxu0 %v56_v2  ;;  %404 = vmatpush3.msra.mxu1 %v154_v5  ;;  %v148_v13 = vld [vmem:[%s752_s3 + $0x40] sm:$0xff]  ;;  %v145_v16 = vld [vmem:[%s752_s3 + $0x28] sm:$0xff]  ;;  %v143_v18 = vld [vmem:[%s752_s3 + $0x18] sm:$0xff] }
  0x23   :  { %394 = vmatprep.subr.mxu0 %v550_v0  ;;  %405 = vmatprep.subr.mxu1 %v550_v0  ;;  %v144_v17 = vld [vmem:[%s752_s3 + $0x20] sm:$0xff]  ;;  %v142_v19 = vld [vmem:[%s752_s3 + $0x10] sm:$0xff]  ;;  %v141_v20 = vld [vmem:[%s752_s3 + $0x8] sm:$0xff] }
  0x24   :  { %395 = vmatpush3.msra.mxu0 %v55_v4  ;;  %406 = vmatpush3.msra.mxu1 %v153_v6  ;;  %v140_v21 = vld [vmem:[%s752_s3] sm:$0xff]  ;;  %v249_v22 = vld [vmem:[%s754_s5 + $0x78] sm:$0xff]  ;;  %v248_v23 = vld [vmem:[%s754_s5 + $0x70] sm:$0xff] }
  0x25   :  { %396 = vmatprep.subr.mxu0 %v550_v0  ;;  %407 = vmatprep.subr.mxu1 %v550_v0  ;;  %v247_v24 = vld [vmem:[%s754_s5 + $0x68] sm:$0xff]  ;;  %v246_v25 = vld [vmem:[%s754_s5 + $0x60] sm:$0xff]  ;;  %v245_v26 = vld [vmem:[%s754_s5 + $0x58] sm:$0xff] }
  0x26   :  { %397 = vmatpush3.msra.mxu0 %v54_v7  ;;  %408 = vmatpush3.msra.mxu1 %v152_v9  ;;  %v244_v27 = vld [vmem:[%s754_s5 + $0x50] sm:$0xff]  ;;  %v243_v28 = vld [vmem:[%s754_s5 + $0x48] sm:$0xff]  ;;  %v242_v29 = vld [vmem:[%s754_s5 + $0x40] sm:$0xff] }
  0x27   :  { %399 = vmatmul.mubr.msk.f32.vlgmr.msra.gmra.mxu0 %vm65_vm1, %v53_v8  ;;  %409 = vmatprep.subr.mxu1 %v550_v0  ;;  %v241_v30 = vld [vmem:[%s754_s5 + $0x38] sm:$0xff]  ;;  %v240_v31 = vld [vmem:[%s754_s5 + $0x30] sm:$0xff]  ;;  %v239_v32 = vld [vmem:[%s754_s5 + $0x28] sm:$0xff] }
  0x28   :  { %436 = vmatprep.subr.mxu0 %v550_v0  ;;  %410 = vmatpush3.msra.mxu1 %v151_v10  ;;  %v238_v33 = vld [vmem:[%s754_s5 + $0x20] sm:$0xff]  ;;  %v237_v34 = vld [vmem:[%s754_s5 + $0x18] sm:$0xff]  ;;  %v236_v40 = vld [vmem:[%s754_s5 + $0x10] sm:$0xff] }
  0x29   :  { %468 = vmatprep.mubr.msk.f32.mxu0 %vm551_vm0, %v550_v0  ;;  %411 = vmatprep.subr.mxu1 %v550_v0  ;;  %v347_v35 = vld [vmem:[%s751_s2] ss:$0 sm:$0xff]  ;;  %v235_v41 = vld [vmem:[%s754_s5 + $0x8] sm:$0xff] }
  0x2a   :  { %412 = vmatpush3.msra.mxu1 %v150_v11  ;;  %437 = vmatpush3.msra.mxu0 %v249_v22  ;;  %v234_v42 = vld [vmem:[%s754_s5] sm:$0xff]  ;;  %s520_s5 = scalar_lea.vmem %s338_s27, 128 }
  0x2b   :  { %413 = vmatprep.subr.mxu1 %v550_v0  ;;  %438 = vmatprep.subr.mxu0 %v550_v0  ;;  %v349_v43 = vld [vmem:[#allocation5] ss:$0 sm:$0xff]  ;;  %p521_p10 = scmp.ne.s32.totalorder %s338_s27, %s520_s5  ;;  %p526_p12 = scmp.lt.s32.totalorder %s520_s5, %s520_s5 }
  0x2c   :  { %414 = vmatpush3.msra.mxu1 %v149_v12  ;;  %439 = vmatpush3.msra.mxu0 %v248_v23  ;;  %v350_v48 = vld [vmem:[%s755_s6] ss:$0 sm:$0xff] }
  0x2d   :  { %415 = vmatprep.subr.mxu1 %v550_v0  ;;  %440 = vmatprep.subr.mxu0 %v550_v0  ;;  %p527_p13 = por %p526_p12, %p525_p11 }
  0x2e   :  { %416 = vmatpush3.msra.mxu1 %v148_v13  ;;  %441 = vmatpush3.msra.mxu0 %v247_v24 }
  0x2f   :  { %417 = vmatprep.subr.mxu1 %v550_v0  ;;  %442 = vmatprep.subr.mxu0 %v550_v0  ;;  %p528_p0 = pnand %p527_p13, %p521_p10 }
  0x30   :  { %418 = vmatpush3.msra.mxu1 %v147_v14  ;;  %443 = vmatpush3.msra.mxu0 %v246_v25 }
  0x31   :  { %419 = vmatprep.subr.mxu1 %v550_v0  ;;  %444 = vmatprep.subr.mxu0 %v550_v0 }
  0x32   :  { %420 = vmatpush3.msra.mxu1 %v146_v15  ;;  %445 = vmatpush3.msra.mxu0 %v245_v26 }
  0x33   :  { %421 = vmatprep.subr.mxu1 %v550_v0  ;;  %446 = vmatprep.subr.mxu0 %v550_v0 }
  0x34   :  { %422 = vmatpush3.msra.mxu1 %v145_v16  ;;  %447 = vmatpush3.msra.mxu0 %v244_v27 }
  0x35   :  { %423 = vmatprep.subr.mxu1 %v550_v0  ;;  %448 = vmatprep.subr.mxu0 %v550_v0 }
  0x36   :  { %424 = vmatpush3.msra.mxu1 %v144_v17  ;;  %449 = vmatpush3.msra.mxu0 %v243_v28 }
  0x37   :  { %425 = vmatprep.subr.mxu1 %v550_v0  ;;  %450 = vmatprep.subr.mxu0 %v550_v0 }
  0x38   :  { %426 = vmatpush3.msra.mxu1 %v143_v18  ;;  %451 = vmatpush3.msra.mxu0 %v242_v29 }
  0x39   :  { %427 = vmatprep.subr.mxu1 %v550_v0  ;;  %452 = vmatprep.subr.mxu0 %v550_v0 }
  0x3a   :  { %428 = vmatpush3.msra.mxu1 %v142_v19  ;;  %453 = vmatpush3.msra.mxu0 %v241_v30 }
  0x3b   :  { %429 = vmatprep.subr.mxu1 %v550_v0  ;;  %454 = vmatprep.subr.mxu0 %v550_v0 }
  0x3c   :  { %430 = vmatpush3.msra.mxu1 %v141_v20  ;;  %455 = vmatpush3.msra.mxu0 %v240_v31 }
  0x3d   :  { %431 = vmatprep.subr.mxu1 %v550_v0  ;;  %456 = vmatprep.subr.mxu0 %v550_v0 }
  0x3e   :  { %432 = vmatpush3.msra.mxu1 %v140_v21  ;;  %457 = vmatpush3.msra.mxu0 %v239_v32 }
  0x3f   :  { %458 = vmatprep.subr.mxu0 %v550_v0 }
  0x40   :  { %459 = vmatpush3.msra.mxu0 %v238_v33 }
  0x41   :  { %460 = vmatprep.subr.mxu0 %v550_v0 }
  0x42   :  { %461 = vmatpush3.msra.mxu0 %v237_v34 }
  0x43   :  { %462 = vmatprep.subr.mxu0 %v550_v0 }
  0x44   :  { %463 = vmatpush3.msra.mxu0 %v236_v40 }
  0x45   :  { %464 = vmatprep.subr.mxu0 %v550_v0 }
  0x46   :  { %465 = vmatpush3.msra.mxu0 %v235_v41 }
  0x47   :  { %466 = vmatprep.subr.mxu0 %v550_v0 }
  0x48   :  { %467 = vmatpush3.msra.mxu0 %v234_v42 }
  0xe7   :  { %v135_v36 = vpop.f32.mrf.mxu0 }
  0xe8   :  { %v136_v37 = vadd.f32 %v347_v35, %v135_v36 }
  0xe9   :  { %v400_v38 = vpop.f32.mrf.mxu0 }
  0xea   :  { %v139_v39 = vmax.f32 %v136_v37, 0.0 }
  0xec   :  { %434 = vmatmul.mubr.f32.vlgmr.msra.gmra.mxu1 %v139_v39 }
 0x1ac   :  { %v229_v44 = vpop.f32.mrf.mxu1 }
 0x1ad   :  { %v230_v45 = vadd.f32 %v349_v43, %v229_v44 }
 0x1ae   :  { %v435_v46 = vpop.f32.mrf.mxu1 }
 0x1af   :  { %v233_v47 = vmax.f32 %v230_v45, 0.0 }
 0x1b1   :  { %469 = vmatmul.mubr.f32.vlgmr.msra.gmra.mxu0 %v233_v47 }
 0x271   :  { %v323_v49 = vpop.f32.mrf.mxu0 }
 0x272   :  { %v324_v50 = vadd.f32 %v350_v48, %v323_v49 }
 0x273   :  { %v470_v51 = vpop.f32.mrf.mxu0 }
 0x274   :  { %478 = vtanh.f32 %v324_v50 }
 0x281   :  { %v479_v52 = vpop.eup %478 }
 0x282   :  { %v328_v53 = vmul.f32 2.0, %v479_v52 }
 0x284   :  { %330 = vst.msk [vmem:[#allocation7] sm:$0xff] %vm329_vm2, %v328_v53 }
 0x285   :  { %531 = shalt.err (!%p528_p0)
}
 0x286   :  { %340 = dma.vmem_to_hbm [thread:$0]  %s338_s27, 128, %s756_s7, [#allocation4]  }
 0x287   :  { %544 = dma.done.wait [#allocation4], 128  }
 0x288   :  { %545 = vsyncadd [#allocation4], 4294967168 }
 0x289   :  { %344 = vsyncpa [#allocation3], 1 }
 0x28a   :  { %345 = vsyncpa [#allocation6], 1 }
 0x28b   :  { %346 = vsyncpa [#allocation4], 1 }

</bundles_post_ra>
